<compile_context>
chip_gen: v5e
topology: v5e:2x2
jax: 0.10.0
libtpu: 0.0.40
codegen_flags: <defaults>
</compile_context>

<pallas_src>
import math

import jax
import jax.numpy as jnp
from jax.experimental import pallas as pl
from jax.experimental.pallas import tpu as pltpu


# --------------------------------------------------------------------------- #
# Kernel
# --------------------------------------------------------------------------- #
def _pos_enc_kernel(x_ref, cls_pe_ref, pe_ref, o_ref):
    # x_ref:      (bt, S*D)   flattened patch tokens for bt batch rows
    # cls_pe_ref: (1, D)      precomputed cls_token + pe[0]   (batch independent)
    # pe_ref:     (1, S*D)    flattened pe[1:]                (batch independent)
    # o_ref:      (bt, L*D)   flattened output rows, L = S + 1
    bt = o_ref.shape[0]
    d = cls_pe_ref.shape[1]
    # Lanes [0, D): constant cls + pe[0] row, broadcast over the batch rows.
    o_ref[:, :d] = jnp.broadcast_to(cls_pe_ref[...], (bt, d))
    # Lanes [D, L*D): aligned elementwise add; pe broadcasts over the batch axis.
    # For D % 128 == 0 this is a pure lane-block offset -> full-width vst.
    o_ref[:, d:] = x_ref[...] + pe_ref[...]


# --------------------------------------------------------------------------- #
# Helpers
# --------------------------------------------------------------------------- #
def make_sinusoidal_pe(max_seq_length: int, d_model: int) -> jnp.ndarray:
    """Exactly matches the PyTorch buffer construction (returns (1, L, D) f32)."""
    position = jnp.arange(max_seq_length, dtype=jnp.float32)[:, None]            # (L, 1)
    div_term = jnp.exp(
        jnp.arange(0, d_model, 2, dtype=jnp.float32) * (-math.log(10000.0) / d_model)
    )                                                                             # (D/2,)
    angles = position * div_term                                                  # (L, D/2)
    pe = jnp.zeros((max_seq_length, d_model), dtype=jnp.float32)
    pe = pe.at[:, 0::2].set(jnp.sin(angles))
    pe = pe.at[:, 1::2].set(jnp.cos(angles))
    return pe[None]                                                               # (1, L, D)


def _tpu_generation():
    """Conservative hardware sniff: (is_v7x, num_tensorcores_per_chip)."""
    try:
        kind = jax.devices()[0].device_kind.lower()
    except Exception:  # pragma: no cover - CPU / interpret fallback
        kind = ""
    is_v7 = ("v7" in kind) or ("tpu7" in kind)
    return is_v7, (2 if is_v7 else 1)


def _choose_batch_tile(B: int, x_row_bytes: int, *, target_bytes: int, num_cores: int) -> int:
    """Batch rows per grid step for the flattened (B, L*D) layout."""
    x_row_bytes = max(int(x_row_bytes), 1)
    bt = int(min(B, max(1, target_bytes // x_row_bytes)))
    if bt < B:
        # Keep the sublane (batch) dim of every block a multiple of 8; never
        # collapse to tiny blocks for awkward/prime B -- the grid uses
        # cdiv(B, bt) and Pallas masks the ragged last block.
        bt = min(B, max(8, (bt // 8) * 8))
    # Megacore (v7x only, 2 TCs): if a single block would already cover the
    # whole batch, split it in two so the "parallel" batch axis shards evenly
    # across both cores -- but only when the split is even and sublane-aligned
    # and each per-core block still moves >= ~2 MiB.  On 1-TC chips (v5e/v6e)
    # splitting a full block only adds per-step overhead.
    if (
        num_cores >= 2
        and bt >= B
        and B % 16 == 0
        and (B // 2) * x_row_bytes >= (2 << 20)
    ):
        bt = B // 2
    return bt


def _build_call(B, S, D, bt, dtype, vmem_limit_bytes, single_buffer_consts):
    L = S + 1
    sd = S * D
    const_kwargs = {"pipeline_mode": pl.Buffered(1)} if single_buffer_consts else {}
    return pl.pallas_call(
        _pos_enc_kernel,
        out_shape=jax.ShapeDtypeStruct((B, L * D), dtype),
        grid_spec=pltpu.PrefetchScalarGridSpec(
            num_scalar_prefetch=0,
            grid=(pl.cdiv(B, bt),),
            in_specs=[
                pl.BlockSpec((bt, sd), lambda i: (i, 0)),                   # x (streamed)
                pl.BlockSpec((1, D), lambda i: (0, 0), **const_kwargs),     # cls + pe[0]
                pl.BlockSpec((1, sd), lambda i: (0, 0), **const_kwargs),    # pe[1:]
            ],
            out_specs=pl.BlockSpec((bt, L * D), lambda i: (i, 0)),
        ),
        compiler_params=pltpu.CompilerParams(
            dimension_semantics=("parallel",),
            vmem_limit_bytes=vmem_limit_bytes,
        ),
    )


# --------------------------------------------------------------------------- #
# Public wrapper
# --------------------------------------------------------------------------- #
def positional_encoding_forward(x: jnp.ndarray,
                                cls_token: jnp.ndarray,
                                pe: jnp.ndarray) -> jnp.ndarray:
    """x: (B, S, D); cls_token: (1, 1, D); pe: (1, S+1, D) -> (B, S+1, D)."""
    B, S, D = x.shape
    L = S + 1
    assert pe.shape == (1, L, D)
    assert cls_token.shape == (1, 1, D)

    # NOTE: casting pe/cls to x.dtype is a deliberate perf choice; for bf16 x
    # this differs from torch's f32 promotion of `x + pe` (documented above).
    dtype = x.dtype
    pe = pe.astype(dtype)
    cls_token = cls_token.astype(dtype)

    # Batch-independent precompute + flattening (all reshapes are contiguous
    # -> free bitcasts).
    cls_pe0 = (cls_token + pe[:, :1, :]).reshape(1, D)     # (1, D)
    pe_rest = pe[:, 1:, :].reshape(1, S * D)               # (1, S*D)
    x_flat = x.reshape(B, S * D)                            # (B, S*D)

    itemsize = jnp.dtype(dtype).itemsize
    x_row_bytes = S * D * itemsize
    out_row_bytes = L * D * itemsize
    const_bytes = (S * D + D) * itemsize

    # Generation-aware budgets.
    is_v7, num_cores = _tpu_generation()
    if is_v7:
        vmem_cap = 48 << 20      # v7x: 64 MiB physical VMEM per TC -> stay well under
        target_bytes = 5 << 20   # faster HBM -> bigger blocks to amortize step cost
    else:
        vmem_cap = 64 << 20      # v5e/v6e: 128 MiB physical VMEM
        target_bytes = 4 << 20

    # Largest x-block that keeps 2*(x + out) blocks + constant blocks inside
    # the generation budget (with compiler headroom), then clamp to the
    # throughput target.
    budget_for_blocks = max(0, vmem_cap - (8 << 20) - 2 * const_bytes)
    max_x_block = (budget_for_blocks * x_row_bytes) // (2 * (x_row_bytes + out_row_bytes))
    bt = _choose_batch_tile(
        B, x_row_bytes,
        target_bytes=max(1, min(target_bytes, max_x_block)),
        num_cores=num_cores,
    )
    # TODO(synk): if a single 8-row block ever exceeded the VMEM budget
    # (S*D*itemsize on the order of MiBs), an extra grid axis tiling S*D would
    # be needed; not required for realistic ViT shapes.

    # Size vmem_limit from the actual pipelined footprint (double-buffered x
    # and out blocks + constants), capped per generation.
    footprint = 2 * (bt * x_row_bytes + bt * out_row_bytes) + 2 * const_bytes
    vmem_limit = int(min(vmem_cap, max(16 << 20, footprint + (4 << 20))))

    try:
        # Preferred path: constant blocks single-buffered.
        out_flat = _build_call(B, S, D, bt, dtype, vmem_limit, True)(x_flat, cls_pe0, pe_rest)
        out_flat = jax.block_until_ready(out_flat)
    except Exception:
        # Fallback if this JAX/Mosaic version rejects Buffered(1) on the
        # top-level pipeline: default double buffering (slightly more VMEM,
        # identical semantics).
        out_flat = _build_call(B, S, D, bt, dtype, vmem_limit, False)(x_flat, cls_pe0, pe_rest)

    return out_flat.reshape(B, L, D)


def reference_forward(x, cls_token, pe):
    B = x.shape[0]
    cls_tokens = jnp.broadcast_to(cls_token, (B, 1, x.shape[2]))
    return jnp.concatenate([cls_tokens, x], axis=1) + pe


# --------------------------------------------------------------------------- #
# Demo / self-check
# --------------------------------------------------------------------------- #
if __name__ == "__main__":
    # Small shapes consistent with the module: d_model=32, max_seq_length=9
    # (patch-token input therefore has S = max_seq_length - 1 = 8 tokens).
    B, S, D = 2, 8, 32
    max_seq_length = S + 1

    key = jax.random.PRNGKey(0)
    k_x, k_cls = jax.random.split(key)

    x = jax.random.normal(k_x, (B, S, D), dtype=jnp.float32)
    # Deterministic parameter init (mirrors nn.Parameter(torch.randn(1, 1, d_model))).
    cls_token = jax.random.normal(k_cls, (1, 1, D), dtype=jnp.float32)
    pe = make_sinusoidal_pe(max_seq_length, D)

    out = positional_encoding_forward(x, cls_token, pe)
    out = jax.block_until_ready(out)

    ref = reference_forward(x, cls_token, pe)
    assert out.shape == (B, max_seq_length, D)
    assert jnp.allclose(out, ref, atol=1e-6, rtol=1e-6), "mismatch vs reference"

    print("KERNEL_OK")
</pallas_src>

<mosaic_0001>
module attributes {stable_mosaic.version = 11 : i64} {
  func.func @_pos_enc_kernel(%arg0: i32, %arg1: memref<2x256xf32, #tpu.memory_space<vmem>>, %arg2: memref<1x32xf32, #tpu.memory_space<vmem>>, %arg3: memref<1x256xf32, #tpu.memory_space<vmem>>, %arg4: memref<2x288xf32, #tpu.memory_space<vmem>>) attributes {dimension_semantics = [#tpu.dimension_semantics<parallel>], iteration_bounds = array<i64: 1>, scalar_prefetch = 0 : i64, scratch_operands = 0 : i64, tpu.core_type = #tpu.core_type<tc>, window_params = [{transform_indices = @transform_0, window_bounds = array<i64: 2, 256>}, {pipeline_mode = #tpu.pipeline_mode<synchronous>, transform_indices = @transform_1, window_bounds = array<i64: 1, 32>}, {pipeline_mode = #tpu.pipeline_mode<synchronous>, transform_indices = @transform_2, window_bounds = array<i64: 1, 256>}, {transform_indices = @transform_3, window_bounds = array<i64: 2, 288>}]} {
    %c0 = arith.constant 0 : index
    %c0_0 = arith.constant 0 : index
    %0 = vector.load %arg2[%c0, %c0_0] : memref<1x32xf32, #tpu.memory_space<vmem>>, vector<1x32xf32>
    %1 = vector.shape_cast %0 : vector<1x32xf32> to vector<1x32xf32>
    %2 = vector.broadcast %1 : vector<1x32xf32> to vector<2x32xf32>
    %c0_1 = arith.constant 0 : index
    %c0_2 = arith.constant 0 : index
    %3 = vector.load %arg4[%c0_1, %c0_2] : memref<2x288xf32, #tpu.memory_space<vmem>>, vector<2x32xf32>
    tpu.vector_store %arg4[%c0_1, %c0_2], %2 {strides = array<i32>} : memref<2x288xf32, #tpu.memory_space<vmem>>, vector<2x32xf32>,
    %c0_3 = arith.constant 0 : index
    %c0_4 = arith.constant 0 : index
    %4 = vector.load %arg1[%c0_3, %c0_4] : memref<2x256xf32, #tpu.memory_space<vmem>>, vector<2x256xf32>
    %c0_5 = arith.constant 0 : index
    %c0_6 = arith.constant 0 : index
    %5 = vector.load %arg3[%c0_5, %c0_6] : memref<1x256xf32, #tpu.memory_space<vmem>>, vector<1x256xf32>
    %6 = vector.broadcast %5 : vector<1x256xf32> to vector<2x256xf32>
    %7 = arith.addf %4, %6 : vector<2x256xf32>
    %c0_7 = arith.constant 0 : index
    %c32 = arith.constant 32 : index
    %8 = vector.load %arg4[%c0_7, %c32] : memref<2x288xf32, #tpu.memory_space<vmem>>, vector<2x256xf32>
    tpu.vector_store %arg4[%c0_7, %c32], %7 {strides = array<i32>} : memref<2x288xf32, #tpu.memory_space<vmem>>, vector<2x256xf32>,
    return
  }
  func.func @transform_0(%arg0: i32) -> (i32, i32) {
    %c0_i32 = arith.constant 0 : i32
    %c0_i32_0 = arith.constant 0 : i32
    return %arg0, %c0_i32 : i32, i32
  }
  func.func @transform_1(%arg0: i32) -> (i32, i32) {
    %c0_i32 = arith.constant 0 : i32
    %c0_i32_0 = arith.constant 0 : i32
    %c0_i32_1 = arith.constant 0 : i32
    return %c0_i32, %c0_i32_0 : i32, i32
  }
  func.func @transform_2(%arg0: i32) -> (i32, i32) {
    %c0_i32 = arith.constant 0 : i32
    %c0_i32_0 = arith.constant 0 : i32
    %c0_i32_1 = arith.constant 0 : i32
    return %c0_i32, %c0_i32_0 : i32, i32
  }
  func.func @transform_3(%arg0: i32) -> (i32, i32) {
    %c0_i32 = arith.constant 0 : i32
    %c0_i32_0 = arith.constant 0 : i32
    return %arg0, %c0_i32 : i32, i32
  }
}

module attributes {stable_mosaic.version = 11 : i64} {
  func.func @_pos_enc_kernel(%arg0: i32, %arg1: memref<2x256xf32, #tpu.memory_space<vmem>>, %arg2: memref<1x32xf32, #tpu.memory_space<vmem>>, %arg3: memref<1x256xf32, #tpu.memory_space<vmem>>, %arg4: memref<2x288xf32, #tpu.memory_space<vmem>>) attributes {dimension_semantics = [#tpu.dimension_semantics<parallel>], iteration_bounds = array<i64: 1>, scalar_prefetch = 0 : i64, scratch_operands = 0 : i64, tpu.core_type = #tpu.core_type<tc>, window_params = [{transform_indices = @transform_0, window_bounds = array<i64: 2, 256>}, {pipeline_mode = #tpu.pipeline_mode<synchronous>, transform_indices = @transform_1, window_bounds = array<i64: 1, 32>}, {pipeline_mode = #tpu.pipeline_mode<synchronous>, transform_indices = @transform_2, window_bounds = array<i64: 1, 256>}, {transform_indices = @transform_3, window_bounds = array<i64: 2, 288>}]} {
    %c0 = arith.constant 0 : index
    %c0_0 = arith.constant 0 : index
    %0 = vector.load %arg2[%c0, %c0_0] : memref<1x32xf32, #tpu.memory_space<vmem>>, vector<1x32xf32>
    %1 = vector.shape_cast %0 : vector<1x32xf32> to vector<1x32xf32>
    %2 = vector.broadcast %1 : vector<1x32xf32> to vector<2x32xf32>
    %c0_1 = arith.constant 0 : index
    %c0_2 = arith.constant 0 : index
    %3 = vector.load %arg4[%c0_1, %c0_2] : memref<2x288xf32, #tpu.memory_space<vmem>>, vector<2x32xf32>
    tpu.vector_store %arg4[%c0_1, %c0_2], %2 {strides = array<i32>} : memref<2x288xf32, #tpu.memory_space<vmem>>, vector<2x32xf32>,
    %c0_3 = arith.constant 0 : index
    %c0_4 = arith.constant 0 : index
    %4 = vector.load %arg1[%c0_3, %c0_4] : memref<2x256xf32, #tpu.memory_space<vmem>>, vector<2x256xf32>
    %c0_5 = arith.constant 0 : index
    %c0_6 = arith.constant 0 : index
    %5 = vector.load %arg3[%c0_5, %c0_6] : memref<1x256xf32, #tpu.memory_space<vmem>>, vector<1x256xf32>
    %6 = vector.broadcast %5 : vector<1x256xf32> to vector<2x256xf32>
    %7 = arith.addf %4, %6 : vector<2x256xf32>
    %c0_7 = arith.constant 0 : index
    %c32 = arith.constant 32 : index
    %8 = vector.load %arg4[%c0_7, %c32] : memref<2x288xf32, #tpu.memory_space<vmem>>, vector<2x256xf32>
    tpu.vector_store %arg4[%c0_7, %c32], %7 {strides = array<i32>} : memref<2x288xf32, #tpu.memory_space<vmem>>, vector<2x256xf32>,
    return
  }
  func.func @transform_0(%arg0: i32) -> (i32, i32) {
    %c0_i32 = arith.constant 0 : i32
    %c0_i32_0 = arith.constant 0 : i32
    return %arg0, %c0_i32 : i32, i32
  }
  func.func @transform_1(%arg0: i32) -> (i32, i32) {
    %c0_i32 = arith.constant 0 : i32
    %c0_i32_0 = arith.constant 0 : i32
    %c0_i32_1 = arith.constant 0 : i32
    return %c0_i32, %c0_i32_0 : i32, i32
  }
  func.func @transform_2(%arg0: i32) -> (i32, i32) {
    %c0_i32 = arith.constant 0 : i32
    %c0_i32_0 = arith.constant 0 : i32
    %c0_i32_1 = arith.constant 0 : i32
    return %c0_i32, %c0_i32_0 : i32, i32
  }
  func.func @transform_3(%arg0: i32) -> (i32, i32) {
    %c0_i32 = arith.constant 0 : i32
    %c0_i32_0 = arith.constant 0 : i32
    return %arg0, %c0_i32 : i32, i32
  }
}

</mosaic_0001>

<bundles_post_ra>
// kernel: tpu_custom_call.1
= control target key start
LH: loop header
LB: loop body
LE: loop exit
PB: predicated region body
PF: predicated region fallthrough
CT: control target
= control target key end

     0   :  { %8 = vsyncpa [#allocation3], 0  ;;  %s248_s0 = inlined_call_operand.hbm [shape: f32[2,256], index: 0, kind: input, shape index: {}]   ;;  %s249_s1 = inlined_call_operand.hbm [shape: f32[1,32], index: 1, kind: input, shape index: {}]   ;;  %s250_s2 = inlined_call_operand.hbm [shape: f32[1,256], index: 2, kind: input, shape index: {}]   ;;  %s251_s3 = inlined_call_operand.hbm [shape: f32[2,288], index: 3, kind: output, shape index: {}]  }
   0x1   :  { %9 = vsyncpa [#allocation6], 0  ;;  %s27_s14 = sshll.u32 %s249_s1, 4  ;;  %s28_s14 = int_to_ptr.hbm [resolvable:$true] %s27_s14 }
   0x2   :  { %10 = vsyncpa [#allocation4], 0  ;;  %s211_s15 = smov [#allocation5]   ;;  %s16_s19 = sshll.u32 %s248_s0, 4  ;;  %s17_s19 = int_to_ptr.hbm [resolvable:$true] %s16_s19 }
   0x3   :  { %s29_s16 = sshll.u32 %s211_s15, 4  ;;  %s212_s20 = smov [#allocation2]   ;;  %s30_s16 = int_to_ptr.vmem [resolvable:$true] %s29_s16 }
   0x4   :  { %32 = dma.hbm_to_vmem [thread:$0]  %s28_s14, 16, %s30_s16, [#allocation6]  }
   0x5   :  { %s18_s21 = sshll.u32 %s212_s20, 4  ;;  %s38_s24 = sshll.u32 %s250_s2, 4  ;;  %s19_s21 = int_to_ptr.vmem [resolvable:$true] %s18_s21  ;;  %s39_s24 = int_to_ptr.hbm [resolvable:$true] %s38_s24 }
   0x6   :  { %21 = dma.hbm_to_vmem [thread:$0]  %s17_s19, 64, %s19_s21, [#allocation3]  }
   0x7   :  { %s213_s1 = smov [#allocation7]  }
   0x8   :  { %s40_s25 = sshll.u32 %s213_s1, 4  ;;  %s41_s25 = int_to_ptr.vmem [resolvable:$true] %s40_s25 }
   0x9   :  { %43 = dma.hbm_to_vmem [thread:$0]  %s39_s24, 32, %s41_s25, [#allocation6]  }
   0xa   :  { %205 = dma.done.wait [#allocation3], 64  }
   0xb   :  { %206 = vsyncadd [#allocation3], 4294967232 }
   0xc   :  { %207 = dma.done.wait [#allocation6], 48  }
   0xd   :  { %208 = vsyncadd [#allocation6], 4294967248  ;;  %v63_v0 = vld [vmem:[#allocation7] sm:$0x3]  ;;  %vm68_vm0 = vcmask 1041408   ;;  %s214_s0 = smov 32  }
   0xe   :  { %v65_v1 = vperm.slane %v63_v0, 0  ;;  %v66_v2 = vperm.slane %v63_v0, 1  ;;  %v62_v3 = vld [vmem:[#allocation2] sm:$0xf]  ;;  %v108_v7 = vld [vmem:[#allocation5] ss:$0 sm:$0xff] }
   0xf   :  { %vm60_vm1 = vcmask 254976   ;;  %vm79_vm2 = vcmask 1041664   ;;  %vm80_vm3 = vcmask 1043458   ;;  %vm82_vm5 = vcmask 259076   ;;  %s215_s2 = smov [#allocation8]   ;;  %s92_s29 = sshll.u32 %s251_s3, 4  ;;  %s93_s29 = int_to_ptr.hbm [resolvable:$true] %s92_s29 }
  0x10   :  { %v67_v4 = vrot.slane %v66_v2, 6  ;;  %61 = vst.msk [vmem:[#allocation8] sm:$0x3] %vm60_vm1, %v108_v7  ;;  %vm81_vm4 = vmor %vm80_vm3, %vm79_vm2  ;;  %s90_s26 = sshll.u32 %s215_s2, 4  ;;  %vm76_vm6 = vcmask 261120   ;;  %s91_s26 = int_to_ptr.vmem [resolvable:$true] %s90_s26 }
  0x11   :  { %vm83_vm7 = vmor %vm82_vm5, %vm81_vm4 }
  0x12   :  { %v69_v5 = vsel %vm68_vm0, %v65_v1, %v67_v4 }
  0x13   :  { %v71_v6 = vadd.f32 %v69_v5, %v62_v3 }
  0x15   :  { %73 = vrot.lane.b32.xlu0 %v71_v6, %s214_s0 }
  0x87   :  { %v74_v8 = vpop.permute.xlu0 %73 }
  0x88   :  { %v75_v9 = vrot.slane %v74_v8, 6 }
  0x8a   :  { %v77_v10 = vsel %vm76_vm6, %v75_v9, %v74_v8 }
  0x8b   :  { %84 = vst.msk [vmem:[#allocation8] sm:$0x3f] %vm83_vm7, %v77_v10 }
  0x8c   :  { %95 = dma.vmem_to_hbm [thread:$0]  %s91_s26, 96, %s93_s29, [#allocation4]  }
  0x8d   :  { %209 = dma.done.wait [#allocation4], 96  }
  0x8e   :  { %210 = vsyncadd [#allocation4], 4294967200 }
  0x8f   :  { %100 = vsyncpa [#allocation3], 1 }
  0x90   :  { %101 = vsyncpa [#allocation6], 1 }
  0x91   :  { %102 = vsyncpa [#allocation4], 1 }

// kernel: tpu_custom_call.1
= control target key start
LH: loop header
LB: loop body
LE: loop exit
PB: predicated region body
PF: predicated region fallthrough
CT: control target
= control target key end

     0   :  { %8 = vsyncpa [#allocation3], 0  ;;  %s248_s0 = inlined_call_operand.hbm [shape: f32[2,256], index: 0, kind: input, shape index: {}]   ;;  %s249_s1 = inlined_call_operand.hbm [shape: f32[1,32], index: 1, kind: input, shape index: {}]   ;;  %s250_s2 = inlined_call_operand.hbm [shape: f32[1,256], index: 2, kind: input, shape index: {}]   ;;  %s251_s3 = inlined_call_operand.hbm [shape: f32[2,288], index: 3, kind: output, shape index: {}]  }
   0x1   :  { %9 = vsyncpa [#allocation6], 0  ;;  %s27_s14 = sshll.u32 %s249_s1, 4  ;;  %s28_s14 = int_to_ptr.hbm [resolvable:$true] %s27_s14 }
   0x2   :  { %10 = vsyncpa [#allocation4], 0  ;;  %s211_s15 = smov [#allocation5]   ;;  %s16_s19 = sshll.u32 %s248_s0, 4  ;;  %s17_s19 = int_to_ptr.hbm [resolvable:$true] %s16_s19 }
   0x3   :  { %s29_s16 = sshll.u32 %s211_s15, 4  ;;  %s212_s20 = smov [#allocation2]   ;;  %s30_s16 = int_to_ptr.vmem [resolvable:$true] %s29_s16 }
   0x4   :  { %32 = dma.hbm_to_vmem [thread:$0]  %s28_s14, 16, %s30_s16, [#allocation6]  }
   0x5   :  { %s18_s21 = sshll.u32 %s212_s20, 4  ;;  %s38_s24 = sshll.u32 %s250_s2, 4  ;;  %s19_s21 = int_to_ptr.vmem [resolvable:$true] %s18_s21  ;;  %s39_s24 = int_to_ptr.hbm [resolvable:$true] %s38_s24 }
   0x6   :  { %21 = dma.hbm_to_vmem [thread:$0]  %s17_s19, 64, %s19_s21, [#allocation3]  }
   0x7   :  { %s213_s1 = smov [#allocation7]  }
   0x8   :  { %s40_s25 = sshll.u32 %s213_s1, 4  ;;  %s41_s25 = int_to_ptr.vmem [resolvable:$true] %s40_s25 }
   0x9   :  { %43 = dma.hbm_to_vmem [thread:$0]  %s39_s24, 32, %s41_s25, [#allocation6]  }
   0xa   :  { %205 = dma.done.wait [#allocation3], 64  }
   0xb   :  { %206 = vsyncadd [#allocation3], 4294967232 }
   0xc   :  { %207 = dma.done.wait [#allocation6], 48  }
   0xd   :  { %208 = vsyncadd [#allocation6], 4294967248  ;;  %v63_v0 = vld [vmem:[#allocation7] sm:$0x3]  ;;  %vm68_vm0 = vcmask 1041408   ;;  %s214_s0 = smov 32  }
   0xe   :  { %v65_v1 = vperm.slane %v63_v0, 0  ;;  %v66_v2 = vperm.slane %v63_v0, 1  ;;  %v62_v3 = vld [vmem:[#allocation2] sm:$0xf]  ;;  %v108_v7 = vld [vmem:[#allocation5] ss:$0 sm:$0xff] }
   0xf   :  { %vm60_vm1 = vcmask 254976   ;;  %vm79_vm2 = vcmask 1041664   ;;  %vm80_vm3 = vcmask 1043458   ;;  %vm82_vm5 = vcmask 259076   ;;  %s215_s2 = smov [#allocation8]   ;;  %s92_s29 = sshll.u32 %s251_s3, 4  ;;  %s93_s29 = int_to_ptr.hbm [resolvable:$true] %s92_s29 }
  0x10   :  { %v67_v4 = vrot.slane %v66_v2, 6  ;;  %61 = vst.msk [vmem:[#allocation8] sm:$0x3] %vm60_vm1, %v108_v7  ;;  %vm81_vm4 = vmor %vm80_vm3, %vm79_vm2  ;;  %s90_s26 = sshll.u32 %s215_s2, 4  ;;  %vm76_vm6 = vcmask 261120   ;;  %s91_s26 = int_to_ptr.vmem [resolvable:$true] %s90_s26 }
  0x11   :  { %vm83_vm7 = vmor %vm82_vm5, %vm81_vm4 }
  0x12   :  { %v69_v5 = vsel %vm68_vm0, %v65_v1, %v67_v4 }
  0x13   :  { %v71_v6 = vadd.f32 %v69_v5, %v62_v3 }
  0x15   :  { %73 = vrot.lane.b32.xlu0 %v71_v6, %s214_s0 }
  0x87   :  { %v74_v8 = vpop.permute.xlu0 %73 }
  0x88   :  { %v75_v9 = vrot.slane %v74_v8, 6 }
  0x8a   :  { %v77_v10 = vsel %vm76_vm6, %v75_v9, %v74_v8 }
  0x8b   :  { %84 = vst.msk [vmem:[#allocation8] sm:$0x3f] %vm83_vm7, %v77_v10 }
  0x8c   :  { %95 = dma.vmem_to_hbm [thread:$0]  %s91_s26, 96, %s93_s29, [#allocation4]  }
  0x8d   :  { %209 = dma.done.wait [#allocation4], 96  }
  0x8e   :  { %210 = vsyncadd [#allocation4], 4294967200 }
  0x8f   :  { %100 = vsyncpa [#allocation3], 1 }
  0x90   :  { %101 = vsyncpa [#allocation6], 1 }
  0x91   :  { %102 = vsyncpa [#allocation4], 1 }

</bundles_post_ra>
